<compile_context>
chip_gen: v7x
topology: tpu7x:2x2x1
jax: 0.10.0
libtpu: 0.0.40
codegen_flags: <defaults>
</compile_context>

<pallas_src>
import functools

import jax
import jax.numpy as jnp
from jax import lax
from jax.experimental import pallas as pl
from jax.experimental.pallas import tpu as pltpu


def _stce_partial_kernel(x_ref, t_ref, o_ref, *, tile_rows, total_rows):
    """Writes the partial loss sum for this row tile into o_ref (shape (1, 1))."""
    i = pl.program_id(0)

    x = x_ref[...].astype(jnp.float32)   # (tile_rows, C)
    t = t_ref[...].astype(jnp.float32)   # (tile_rows, C)

    # Numerically-stable logsumexp along the class (lane) axis.
    m = jnp.max(x, axis=-1, keepdims=True)                                  # (tr, 1)
    lse = jnp.log(jnp.sum(jnp.exp(x - m), axis=-1, keepdims=True))          # (tr, 1)

    # sum(-t * (x - m - lse)) = (m + lse) * sum(t) - sum(t * x)
    sum_t = jnp.sum(t, axis=-1, keepdims=True)                              # (tr, 1)
    sum_tx = jnp.sum(t * x, axis=-1, keepdims=True)                         # (tr, 1)
    row_loss = (m + lse) * sum_t - sum_tx                                   # (tr, 1)

    # Mask padded rows of the last (boundary) tile.
    row_idx = i * tile_rows + lax.broadcasted_iota(jnp.int32, (tile_rows, 1), 0)
    row_loss = jnp.where(row_idx < total_rows, row_loss, 0.0)

    # Single cheap sublane reduction per tile -> (1, 1) partial sum.
    o_ref[...] = jnp.sum(row_loss, axis=0, keepdims=True)


def soft_target_cross_entropy(x, target, *, tile_rows=None,
                              pipeline_vmem_budget_bytes=32 << 20):
    """x, target: (N, C) (f32 or bf16). Returns scalar mean loss (float32)."""
    assert x.shape == target.shape and x.ndim == 2
    N, C = x.shape

    if tile_rows is None:
        # Size the row tile so (2 inputs) x (2 pipeline buffers) x tile bytes fits
        # the budget.  Budget is conservative enough for v7x's 64 MiB VMEM while
        # still giving multi-MiB DMAs on every generation.
        bytes_per_row = C * (x.dtype.itemsize + target.dtype.itemsize)
        max_rows = max(8, (pipeline_vmem_budget_bytes // (2 * bytes_per_row)) // 8 * 8)
        tile_rows = min(max_rows, 2048)

    # tile_rows must be a multiple of 8; never exceed N rounded up to 8.
    tile_rows = max(8, (tile_rows // 8) * 8)
    tile_rows = min(tile_rows, pl.cdiv(N, 8) * 8)
    num_tiles = pl.cdiv(N, tile_rows)

    kernel = functools.partial(_stce_partial_kernel,
                               tile_rows=tile_rows, total_rows=N)

    cost = pl.CostEstimate(
        flops=5 * N * C,
        transcendentals=N * C + N,
        bytes_accessed=(x.size * x.dtype.itemsize
                        + target.size * target.dtype.itemsize
                        + num_tiles * 4),
    )

    partials = pl.pallas_call(
        kernel,
        out_shape=jax.ShapeDtypeStruct((num_tiles, 1), jnp.float32),
        grid_spec=pltpu.PrefetchScalarGridSpec(
            num_scalar_prefetch=0,
            grid=(num_tiles,),
            in_specs=[
                pl.BlockSpec((tile_rows, C), lambda i: (i, 0)),
                pl.BlockSpec((tile_rows, C), lambda i: (i, 0)),
            ],
            out_specs=pl.BlockSpec((1, 1), lambda i: (i, 0)),
        ),
        compiler_params=pltpu.CompilerParams(
            # Each tile writes its own partial -> no cross-step dependence,
            # so the row-tile axis can be sharded across TensorCores (v7x).
            dimension_semantics=("parallel",),
            vmem_limit_bytes=48 << 20,
        ),
        cost_estimate=cost,
    )(x, target)

    # Tiny final reduction + mean in plain JAX.
    return jnp.sum(partials) / jnp.float32(N)


def _ref_loss(x, target):
    x32 = x.astype(jnp.float32)
    t32 = target.astype(jnp.float32)
    return jnp.mean(jnp.sum(-t32 * jax.nn.log_softmax(x32, axis=-1), axis=-1))


if __name__ == "__main__":
    key = jax.random.PRNGKey(0)
    k1, k2, k3, k4 = jax.random.split(key, 4)

    # Small shapes consistent with the module: batch of rows x classes.
    N, C = 16, 32
    x = jax.random.normal(k1, (N, C), dtype=jnp.float32)
    target = jax.nn.softmax(jax.random.normal(k2, (N, C), dtype=jnp.float32), axis=-1)

    loss = jax.block_until_ready(soft_target_cross_entropy(x, target))
    ref = _ref_loss(x, target)
    assert jnp.allclose(loss, ref, atol=1e-5, rtol=1e-5), (loss, ref)

    # N not divisible by 8 -> exercises the row-masking path.
    N2, C2 = 13, 32
    x2 = jax.random.normal(k3, (N2, C2), dtype=jnp.float32)
    target2 = jax.nn.softmax(jax.random.normal(k4, (N2, C2), dtype=jnp.float32), axis=-1)
    loss2 = jax.block_until_ready(soft_target_cross_entropy(x2, target2))
    ref2 = _ref_loss(x2, target2)
    assert jnp.allclose(loss2, ref2, atol=1e-5, rtol=1e-5), (loss2, ref2)

    # bf16 inputs (half the HBM traffic); math still in f32 inside the kernel.
    loss_bf16 = jax.block_until_ready(
        soft_target_cross_entropy(x.astype(jnp.bfloat16), target.astype(jnp.bfloat16)))
    ref_bf16 = _ref_loss(x.astype(jnp.bfloat16), target.astype(jnp.bfloat16))
    assert jnp.allclose(loss_bf16, ref_bf16, atol=2e-2, rtol=2e-2), (loss_bf16, ref_bf16)

    print("KERNEL_OK")
</pallas_src>

<mosaic_0001>
module attributes {stable_mosaic.version = 11 : i64} {
  func.func @_stce_partial_kernel(%arg0: i32, %arg1: memref<16x32xf32, #tpu.memory_space<vmem>>, %arg2: memref<16x32xf32, #tpu.memory_space<vmem>>, %arg3: memref<1x1xf32, #tpu.memory_space<vmem>>) attributes {dimension_semantics = [#tpu.dimension_semantics<parallel>], iteration_bounds = array<i64: 1>, scalar_prefetch = 0 : i64, scratch_operands = 0 : i64, tpu.core_type = #tpu.core_type<tc>, window_params = [{transform_indices = @transform_0, window_bounds = array<i64: 16, 32>}, {transform_indices = @transform_1, window_bounds = array<i64: 16, 32>}, {transform_indices = @transform_2, window_bounds = array<i64: 1, 1>}]} {
    %c0 = arith.constant 0 : index
    %c0_0 = arith.constant 0 : index
    %0 = vector.load %arg1[%c0, %c0_0] : memref<16x32xf32, #tpu.memory_space<vmem>>, vector<16x32xf32>
    %c0_1 = arith.constant 0 : index
    %c0_2 = arith.constant 0 : index
    %1 = vector.load %arg2[%c0_1, %c0_2] : memref<16x32xf32, #tpu.memory_space<vmem>>, vector<16x32xf32>
    %cst = arith.constant dense<0xFF800000> : vector<16xf32>
    %2 = vector.multi_reduction <maximumf>, %0, %cst [1] : vector<16x32xf32> to vector<16xf32>
    %3 = vector.shape_cast %2 : vector<16xf32> to vector<16x1xf32>
    %4 = vector.broadcast %3 : vector<16x1xf32> to vector<16x32xf32>
    %5 = arith.subf %0, %4 : vector<16x32xf32>
    %6 = math.exp %5 : vector<16x32xf32>
    %cst_3 = arith.constant dense<0.000000e+00> : vector<16xf32>
    %7 = vector.multi_reduction <add>, %6, %cst_3 [1] : vector<16x32xf32> to vector<16xf32>
    %8 = vector.shape_cast %7 : vector<16xf32> to vector<16x1xf32>
    %9 = math.log %8 : vector<16x1xf32>
    %cst_4 = arith.constant dense<0.000000e+00> : vector<16xf32>
    %10 = vector.multi_reduction <add>, %1, %cst_4 [1] : vector<16x32xf32> to vector<16xf32>
    %11 = vector.shape_cast %10 : vector<16xf32> to vector<16x1xf32>
    %12 = arith.mulf %1, %0 : vector<16x32xf32>
    %cst_5 = arith.constant dense<0.000000e+00> : vector<16xf32>
    %13 = vector.multi_reduction <add>, %12, %cst_5 [1] : vector<16x32xf32> to vector<16xf32>
    %14 = vector.shape_cast %13 : vector<16xf32> to vector<16x1xf32>
    %15 = arith.addf %3, %9 : vector<16x1xf32>
    %16 = arith.mulf %15, %11 : vector<16x1xf32>
    %17 = arith.subf %16, %14 : vector<16x1xf32>
    %c16_i32 = arith.constant 16 : i32
    %18 = arith.muli %arg0, %c16_i32 : i32
    %19 = tpu.iota {dimensions = array<i32: 0>} : vector<16x1xi32>
    %20 = vector.broadcast %18 : i32 to vector<16x1xi32>
    %21 = arith.addi %20, %19 : vector<16x1xi32>
    %c16_i32_6 = arith.constant 16 : i32
    %22 = vector.broadcast %c16_i32_6 : i32 to vector<16x1xi32>
    %23 = arith.cmpi slt, %21, %22 : vector<16x1xi32>
    %cst_7 = arith.constant 0.000000e+00 : f32
    %24 = vector.broadcast %cst_7 : f32 to vector<16x1xf32>
    %25 = arith.select %23, %17, %24 : vector<16x1xi1>, vector<16x1xf32>
    %cst_8 = arith.constant dense<0.000000e+00> : vector<1xf32>
    %26 = vector.multi_reduction <add>, %25, %cst_8 [0] : vector<16x1xf32> to vector<1xf32>
    %27 = vector.shape_cast %26 : vector<1xf32> to vector<1x1xf32>
    %c0_9 = arith.constant 0 : index
    %c0_10 = arith.constant 0 : index
    %28 = vector.load %arg3[%c0_9, %c0_10] : memref<1x1xf32, #tpu.memory_space<vmem>>, vector<1x1xf32>
    tpu.vector_store %arg3[%c0_9, %c0_10], %27 {strides = array<i32>} : memref<1x1xf32, #tpu.memory_space<vmem>>, vector<1x1xf32>,
    return
  }
  func.func @transform_0(%arg0: i32) -> (i32, i32) {
    %c0_i32 = arith.constant 0 : i32
    %c0_i32_0 = arith.constant 0 : i32
    return %arg0, %c0_i32 : i32, i32
  }
  func.func @transform_1(%arg0: i32) -> (i32, i32) {
    %c0_i32 = arith.constant 0 : i32
    %c0_i32_0 = arith.constant 0 : i32
    return %arg0, %c0_i32 : i32, i32
  }
  func.func @transform_2(%arg0: i32) -> (i32, i32) {
    %c0_i32 = arith.constant 0 : i32
    %c0_i32_0 = arith.constant 0 : i32
    return %arg0, %c0_i32 : i32, i32
  }
}

</mosaic_0001>

<bundles_post_ra>
// kernel: tpu_custom_call.1
= control target key start
LH: loop header
LB: loop body
LE: loop exit
PB: predicated region body
PF: predicated region fallthrough
CT: control target
= control target key end

     0   :  { %7 = vsyncpa [#allocation3], 0  ;;  %s272_s0 = inlined_call_operand.hbm [shape: f32[16,32], index: 0, kind: input, shape index: {}]   ;;  %s273_s1 = inlined_call_operand.hbm [shape: f32[16,32], index: 1, kind: input, shape index: {}]   ;;  %s274_s2 = inlined_call_operand.hbm [shape: f32[1,1], index: 2, kind: output, shape index: {}]  }
   0x1   :  { %8 = vsyncpa [#allocation6], 0 }
   0x2   :  { %9 = vsyncpa [#allocation4], 0  ;;  %s208_s9 = smov [#allocation2]   ;;  %s136_s13 = scalar_lea.hbm %s272_s0, 256 }
   0x3   :  { %s15_s10 = sshll.u32 %s208_s9, 4  ;;  %p137_p0 = scmp.ne.s32.totalorder %s272_s0, %s136_s13  ;;  %s16_s10 = int_to_ptr.vmem [resolvable:$true] %s15_s10 }
   0x4   :  { %p140_p1 = scmp.lt.u32.totalorder %s136_s13, %s272_s0 }
   0x6   :  { %p142_p2 = pnand %p140_p1, %p137_p0 }
   0x8   :  { %145 = shalt.err (!%p142_p2)
}
   0x9   :  { %s146_s18 = scalar_lea.vmem %s16_s10, 256  ;;  %p151_p4 = scmp.lt.s32.totalorder %s16_s10, %s16_s10 }
   0xa   :  { %p147_p3 = scmp.ne.s32.totalorder %s16_s10, %s146_s18  ;;  %p152_p5 = scmp.lt.s32.totalorder %s146_s18, %s146_s18 }
   0xc   :  { %p153_p6 = por %p152_p5, %p151_p4 }
   0xe   :  { %p154_p7 = pnand %p153_p6, %p147_p3 }
  0x10   :  { %157 = shalt.err (!%p154_p7)
}
  0x11   :  { %s209_s19 = smov 128   ;;  %s210_s20 = smov 8  }
  0x12   :  { %21 = dma.hbm_to_vmem [thread:$0]  %s272_s0, 256, %s16_s10, [#allocation3], %s209_s19, %s209_s19, %s210_s20  }
  0x13   :  { %s211_s23 = smov [#allocation5]   ;;  %s158_s27 = scalar_lea.hbm %s273_s1, 256 }
  0x14   :  { %s27_s24 = sshll.u32 %s211_s23, 4  ;;  %p159_p8 = scmp.ne.s32.totalorder %s273_s1, %s158_s27  ;;  %s28_s24 = int_to_ptr.vmem [resolvable:$true] %s27_s24 }
  0x15   :  { %p162_p9 = scmp.lt.u32.totalorder %s158_s27, %s273_s1 }
  0x17   :  { %p164_p10 = pnand %p162_p9, %p159_p8 }
  0x19   :  { %167 = shalt.err (!%p164_p10)
}
  0x1a   :  { %s168_s4 = scalar_lea.vmem %s28_s24, 256  ;;  %p173_p12 = scmp.lt.s32.totalorder %s28_s24, %s28_s24 }
  0x1b   :  { %p169_p11 = scmp.ne.s32.totalorder %s28_s24, %s168_s4  ;;  %p174_p13 = scmp.lt.s32.totalorder %s168_s4, %s168_s4 }
  0x1d   :  { %p175_p0 = por %p174_p13, %p173_p12 }
  0x1f   :  { %p176_p1 = pnand %p175_p0, %p169_p11 }
  0x21   :  { %179 = shalt.err (!%p176_p1)
}
  0x22   :  { %33 = dma.hbm_to_vmem [thread:$0]  %s273_s1, 256, %s28_s24, [#allocation6], %s209_s19, %s209_s19, %s210_s20  }
  0x23   :  { %202 = dma.done.wait [#allocation3], 256  }
  0x24   :  { %203 = vsyncadd [#allocation3], 4294967040 }
  0x25   :  { %204 = dma.done.wait [#allocation6], 256  }
  0x26   :  { %205 = vsyncadd [#allocation6], 4294967040  ;;  %vm44_vm0 = vcmask 261120   ;;  %v40_v0 = vld [vmem:[#allocation2] sm:$0xff]  ;;  %v41_v1 = vld [vmem:[#allocation2 + $0x8] sm:$0xff]  ;;  %s212_s1 = smov [#allocation7]  }
  0x27   :  { %v45_v2 = vsel %vm44_vm0, %v40_v0, -inf  ;;  %v48_v3 = vsel %vm44_vm0, %v41_v1, -inf  ;;  %v42_v4 = vld [vmem:[#allocation5] sm:$0xff]  ;;  %v43_v17 = vld [vmem:[#allocation5 + $0x8] sm:$0xff]  ;;  %s113_s6 = sshll.u32 %s212_s1, 4  ;;  %vm105_vm1 = vcmask 0   ;;  %s114_s6 = int_to_ptr.vmem [resolvable:$true] %s113_s6 }
  0x28   :  { %46 = vmax.xlane.f32.xlu0 %v45_v2  ;;  %v67_v5 = vsel %vm44_vm0, %v42_v4, 0.0  ;;  %v73_v6 = vmul.f32 %v42_v4, %v40_v0  ;;  %v70_v19 = vsel %vm44_vm0, %v43_v17, 0.0  ;;  %v74_v20 = vmul.f32 %v43_v17, %v41_v1  ;;  %s180_s7 = scalar_lea.vmem %s114_s6, 16  ;;  %s184_s8 = scalar_lea.vmem %s114_s6, 32 }
  0x29   :  { %p181_p2 = scmp.ne.s32.totalorder %s114_s6, %s180_s7  ;;  %p185_p3 = scmp.lt.s32.totalorder %s114_s6, %s114_s6 }
  0x2a   :  { %v75_v7 = vsel %vm44_vm0, %v73_v6, 0.0  ;;  %v78_v21 = vsel %vm44_vm0, %v74_v20, 0.0  ;;  %p186_p4 = scmp.lt.s32.totalorder %s184_s8, %s180_s7 }
  0x2c   :  { %49 = vmax.xlane.f32.xlu0 %v48_v3  ;;  %p187_p5 = por %p186_p4, %p185_p3 }
  0x2e   :  { %p188_p6 = pnand %p187_p5, %p181_p2 }
  0x30   :  { %68 = vadd.xlane.f32.xlu0 %v67_v5 }
  0x34   :  { %76 = vadd.xlane.f32.xlu0 %v75_v7 }
  0xb5   :  { %v47_v8 = vpop.xlane.xlu0 %46 }
  0xb6   :  { %v51_v9 = vsub.f32 %v40_v0, %v47_v8 }
  0xb8   :  { %v53_v10 = vmul.f32 1.442695, %v51_v9 }
  0xb9   :  { %v50_v11 = vpop.xlane.xlu0 %49 }
  0xba   :  { %128 = vpow2.f32 %v53_v10  ;;  %v52_v12 = vsub.f32 %v41_v1, %v50_v11 }
  0xbc   :  { %v55_v13 = vmul.f32 1.442695, %v52_v12 }
  0xbd   :  { %v69_v26 = vpop.xlane.xlu0 %68 }
  0xbe   :  { %130 = vpow2.f32 %v55_v13 }
  0xc1   :  { %v77_v33 = vpop.xlane.xlu0 %76 }
  0xc4   :  { %v129_v14 = vpop.eup %128 }
  0xc5   :  { %v57_v15 = vsel %vm44_vm0, %v129_v14, 0.0 }
  0xc6   :  { %58 = vadd.xlane.f32.xlu1 %v57_v15 }
  0xc8   :  { %v131_v16 = vpop.eup %130 }
  0xc9   :  { %v60_v18 = vsel %vm44_vm0, %v131_v16, 0.0 }
  0xca   :  { %61 = vadd.xlane.f32.xlu1 %v60_v18 }
  0xce   :  { %71 = vadd.xlane.f32.xlu1 %v70_v19 }
  0xd2   :  { %79 = vadd.xlane.f32.xlu1 %v78_v21 }
 0x153   :  { %v59_v22 = vpop.xlane.xlu1 %58 }
 0x154   :  { %132 = vlog2.f32 %v59_v22 }
 0x157   :  { %v62_v23 = vpop.xlane.xlu1 %61 }
 0x158   :  { %134 = vlog2.f32 %v62_v23 }
 0x15b   :  { %v72_v27 = vpop.xlane.xlu1 %71 }
 0x15e   :  { %v133_v24 = vpop.eup %132 }
 0x15f   :  { %v64_v25 = vmul.f32 0.6931472, %v133_v24  ;;  %v80_v34 = vpop.xlane.xlu1 %79 }
 0x161   :  { %v81_v28 = vadd.f32 %v64_v25, %v47_v8 }
 0x162   :  { %v135_v29 = vpop.eup %134 }
 0x163   :  { %v66_v30 = vmul.f32 0.6931472, %v135_v29  ;;  %v83_v31 = vmul.f32 %v81_v28, %v69_v26 }
 0x165   :  { %v82_v32 = vadd.f32 %v66_v30, %v50_v11  ;;  %v85_v36 = vsub.f32 %v83_v31, %v77_v33 }
 0x167   :  { %v84_v35 = vmul.f32 %v82_v32, %v72_v27 }
 0x169   :  { %v86_v37 = vsub.f32 %v84_v35, %v80_v34 }
 0x16b   :  { %v98_v38 = vadd.f32 %v86_v37, %v85_v36 }
 0x16d   :  { %v99_v39 = vrot.slane %v98_v38, 4 }
 0x16f   :  { %v100_v40 = vadd.f32 %v99_v39, %v98_v38 }
 0x171   :  { %v101_v41 = vrot.slane %v100_v40, 2 }
 0x173   :  { %v102_v42 = vadd.f32 %v101_v41, %v100_v40 }
 0x175   :  { %v103_v43 = vrot.slane %v102_v42, 1 }
 0x177   :  { %v104_v44 = vadd.f32 %v103_v43, %v102_v42 }
 0x179   :  { %106 = vst.msk [vmem:[#allocation7] sm:$0x1] %vm105_vm1, %v104_v44 }
 0x17a   :  { %191 = shalt.err (!%p188_p6)
}
 0x17b   :  { %s192_s11 = scalar_lea.hbm %s274_s2, 16 }
 0x17c   :  { %p193_p7 = scmp.ne.s32.totalorder %s274_s2, %s192_s11  ;;  %p196_p8 = scmp.lt.u32.totalorder %s192_s11, %s274_s2 }
 0x17e   :  { %p198_p9 = pnand %p196_p8, %p193_p7 }
 0x180   :  { %201 = shalt.err (!%p198_p9)
}
 0x181   :  { %116 = dma.vmem_to_hbm [thread:$0]  %s114_s6, 16, %s274_s2, [#allocation4]  }
 0x182   :  { %206 = dma.done.wait [#allocation4], 16  }
 0x183   :  { %207 = vsyncadd [#allocation4], 4294967280 }
 0x184   :  { %120 = vsyncpa [#allocation3], 1 }
 0x185   :  { %121 = vsyncpa [#allocation6], 1 }
 0x186   :  { %122 = vsyncpa [#allocation4], 1 }

</bundles_post_ra>
